<compile_context>
chip_gen: v7x
topology: tpu7x:2x2x1
jax: 0.10.0
libtpu: 0.0.40
codegen_flags: <defaults>
</compile_context>

<pallas_src>
import functools

import jax
import jax.numpy as jnp
from jax.experimental import pallas as pl
from jax.experimental.pallas import tpu as pltpu


def _round_up(n: int, m: int) -> int:
    return ((n + m - 1) // m) * m


def _mlp_kernel(x_ref, w1_ref, b1_ref, w2_ref, b2_ref, o_ref):
    # fc1: (TILE_B, in_size) @ (in_size, hid_p) + (1, hid_p); f32 MXU accumulation.
    h = jnp.dot(x_ref[...], w1_ref[...], preferred_element_type=jnp.float32)
    # Bias + ReLU on the VPU (free slots; kernel is DMA-bound).
    h = jnp.maximum(h + b1_ref[...], 0.0)
    # fc2 on the f32 accumulator directly: (TILE_B, hid_p) @ (hid_p, out_size).
    y = jnp.dot(h, w2_ref[...], preferred_element_type=jnp.float32)
    o_ref[...] = (y + b2_ref[...]).astype(o_ref.dtype)


def prepare_params(w1, b1, w2, b2):
    """One-time weight prep (call once, reuse across inference calls).

    Only the *hidden* dim is padded to 128 lanes: hidden activations never touch
    HBM per grid step, so this padding is free at runtime, while keeping the
    fc1->fc2 handoff lane-aligned. Input / output feature dims stay at their
    natural widths so the streamed x / out HBM traffic is unpadded.
    Zero padding contributes exactly 0 through matmul + ReLU, so math is unchanged.
    """
    in_size, hidden = w1.shape
    out_size = w2.shape[1]
    hid_p = _round_up(hidden, 128)
    w1p = jnp.pad(w1, ((0, 0), (0, hid_p - hidden)))          # (in_size, hid_p)
    b1p = jnp.pad(b1, ((0, 0), (0, hid_p - hidden)))          # (1, hid_p)
    w2p = jnp.pad(w2, ((0, hid_p - hidden), (0, 0)))          # (hid_p, out_size)
    b2p = b2                                                  # (1, out_size)
    return w1p, b1p, w2p, b2p


@functools.partial(jax.jit, static_argnames=("tile_b",))
def crop_recommendation_forward(x, w1p, b1p, w2p, b2p, *, tile_b=1024):
    """Pallas forward pass.

    x  : (batch, input_size)
    w1p: (input_size, hid_p)   b1p: (1, hid_p)
    w2p: (hid_p, output_size)  b2p: (1, output_size)
    (w1p/b1p/w2p/b2p come from prepare_params().)
    returns (batch, output_size)
    """
    batch, in_size = x.shape
    hid_p = w1p.shape[1]
    out_size = w2p.shape[1]

    # --- Balanced batch tiling (no mostly-junk tail tiles). --------------------
    n_tiles = pl.cdiv(batch, tile_b)
    tb = _round_up(pl.cdiv(batch, n_tiles), 8)
    batch_p = _round_up(batch, tb)
    grid = (batch_p // tb,)

    # Pad only the batch rows (at most tb-1 rows; usually just a remainder-of-8).
    xp = x if batch_p == batch else jnp.pad(x, ((0, batch_p - batch), (0, 0)))

    out_padded = pl.pallas_call(
        _mlp_kernel,
        out_shape=jax.ShapeDtypeStruct((batch_p, out_size), x.dtype),
        grid=grid,
        in_specs=[
            # Streamed per grid step, natural 7-wide lanes (auto double-buffered).
            pl.BlockSpec((tb, in_size), lambda i: (i, 0)),
            # Weights / biases: same block every step -> pinned in VMEM.
            pl.BlockSpec((in_size, hid_p), lambda i: (0, 0)),
            pl.BlockSpec((1, hid_p), lambda i: (0, 0)),
            pl.BlockSpec((hid_p, out_size), lambda i: (0, 0)),
            pl.BlockSpec((1, out_size), lambda i: (0, 0)),
        ],
        # True-width output (masked partial stores are fine: kernel is DMA-bound).
        out_specs=pl.BlockSpec((tb, out_size), lambda i: (i, 0)),
        compiler_params=pltpu.CompilerParams(
            dimension_semantics=("parallel",),
        ),
    )(xp, w1p, b1p, w2p, b2p)

    # Slice off padded batch rows only (no lane slicing needed anymore).
    return out_padded if batch_p == batch else out_padded[:batch]


def init_params(key, input_size, hidden_size, output_size, dtype=jnp.float32):
    """Deterministic init mimicking nn.Linear's U(-1/sqrt(fan_in), 1/sqrt(fan_in))."""
    k1, k2, k3, k4 = jax.random.split(key, 4)
    bound1 = 1.0 / (input_size ** 0.5)
    bound2 = 1.0 / (hidden_size ** 0.5)
    w1 = jax.random.uniform(k1, (input_size, hidden_size), dtype, -bound1, bound1)
    b1 = jax.random.uniform(k2, (1, hidden_size), dtype, -bound1, bound1)
    w2 = jax.random.uniform(k3, (hidden_size, output_size), dtype, -bound2, bound2)
    b2 = jax.random.uniform(k4, (1, output_size), dtype, -bound2, bound2)
    return w1, b1, w2, b2


def reference_forward(x, w1, b1, w2, b2):
    h = jnp.maximum(x @ w1 + b1, 0.0)
    return h @ w2 + b2


if __name__ == "__main__":
    # Crop-recommendation-like shapes:
    # 7 soil/weather features -> 32 hidden units -> 22 crop classes.
    input_size, hidden_size, output_size = 7, 32, 22

    key = jax.random.PRNGKey(0)
    kx, kp, kx2 = jax.random.split(key, 3)
    w1, b1, w2, b2 = init_params(kp, input_size, hidden_size, output_size)

    # One-time weight prep (hoisted out of the per-call path).
    w1p, b1p, w2p, b2p = prepare_params(w1, b1, w2, b2)

    # 1) Small batch (original use case; single grid step).
    batch = 8
    x = jax.random.normal(kx, (batch, input_size), jnp.float32)
    out = jax.block_until_ready(crop_recommendation_forward(x, w1p, b1p, w2p, b2p))
    ref = reference_forward(x, w1, b1, w2, b2)
    assert out.shape == (batch, output_size)
    assert jnp.allclose(out, ref, atol=1e-5, rtol=1e-5)

    # 2) Larger batch exercising balanced tiling (600 -> one 600-row tile here;
    #    larger batches split into equal-sized tiles across the parallel grid).
    batch2 = 600
    x2 = jax.random.normal(kx2, (batch2, input_size), jnp.float32)
    out2 = jax.block_until_ready(crop_recommendation_forward(x2, w1p, b1p, w2p, b2p))
    ref2 = reference_forward(x2, w1, b1, w2, b2)
    assert out2.shape == (batch2, output_size)
    assert jnp.allclose(out2, ref2, atol=1e-5, rtol=1e-5)

    # 3) Multi-tile batch (forces >=3 balanced grid steps with tile_b=1024).
    batch3 = 3000
    x3 = jax.random.normal(jax.random.PRNGKey(7), (batch3, input_size), jnp.float32)
    out3 = jax.block_until_ready(crop_recommendation_forward(x3, w1p, b1p, w2p, b2p))
    ref3 = reference_forward(x3, w1, b1, w2, b2)
    assert out3.shape == (batch3, output_size)
    assert jnp.allclose(out3, ref3, atol=1e-5, rtol=1e-5)

    print("KERNEL_OK")
</pallas_src>

<mosaic_0001>
module attributes {stable_mosaic.version = 11 : i64} {
  func.func @_mlp_kernel(%arg0: i32, %arg1: memref<8x7xf32, #tpu.memory_space<vmem>>, %arg2: memref<7x128xf32, #tpu.memory_space<vmem>>, %arg3: memref<1x128xf32, #tpu.memory_space<vmem>>, %arg4: memref<128x22xf32, #tpu.memory_space<vmem>>, %arg5: memref<1x22xf32, #tpu.memory_space<vmem>>, %arg6: memref<8x22xf32, #tpu.memory_space<vmem>>) attributes {dimension_semantics = [#tpu.dimension_semantics<parallel>], iteration_bounds = array<i64: 1>, scalar_prefetch = 0 : i64, scratch_operands = 0 : i64, tpu.core_type = #tpu.core_type<tc>, window_params = [{transform_indices = @transform_0, window_bounds = array<i64: 8, 7>}, {pipeline_mode = #tpu.pipeline_mode<synchronous>, transform_indices = @transform_1, window_bounds = array<i64: 7, 128>}, {pipeline_mode = #tpu.pipeline_mode<synchronous>, transform_indices = @transform_2, window_bounds = array<i64: 1, 128>}, {pipeline_mode = #tpu.pipeline_mode<synchronous>, transform_indices = @transform_3, window_bounds = array<i64: 128, 22>}, {pipeline_mode = #tpu.pipeline_mode<synchronous>, transform_indices = @transform_4, window_bounds = array<i64: 1, 22>}, {transform_indices = @transform_5, window_bounds = array<i64: 8, 22>}]} {
    %c0 = arith.constant 0 : index
    %c0_0 = arith.constant 0 : index
    %0 = vector.load %arg1[%c0, %c0_0] : memref<8x7xf32, #tpu.memory_space<vmem>>, vector<8x7xf32>
    %c0_1 = arith.constant 0 : index
    %c0_2 = arith.constant 0 : index
    %1 = vector.load %arg2[%c0_1, %c0_2] : memref<7x128xf32, #tpu.memory_space<vmem>>, vector<7x128xf32>
    %cst = arith.constant dense<0.000000e+00> : vector<8x128xf32>
    %2 = tpu.matmul %0, %1, %cst {dimension_numbers = #tpu.dot_dimension_numbers<[1], [0], [0], [1], [0, 0, 1, 1], [], []>} : vector<8x7xf32>, vector<7x128xf32>, vector<8x128xf32> -> vector<8x128xf32>
    %c0_3 = arith.constant 0 : index
    %c0_4 = arith.constant 0 : index
    %3 = vector.load %arg3[%c0_3, %c0_4] : memref<1x128xf32, #tpu.memory_space<vmem>>, vector<1x128xf32>
    %4 = vector.broadcast %3 : vector<1x128xf32> to vector<8x128xf32>
    %5 = arith.addf %2, %4 : vector<8x128xf32>
    %cst_5 = arith.constant 0.000000e+00 : f32
    %6 = vector.broadcast %cst_5 : f32 to vector<8x128xf32>
    %7 = arith.maximumf %5, %6 : vector<8x128xf32>
    %c0_6 = arith.constant 0 : index
    %c0_7 = arith.constant 0 : index
    %8 = vector.load %arg4[%c0_6, %c0_7] : memref<128x22xf32, #tpu.memory_space<vmem>>, vector<128x22xf32>
    %cst_8 = arith.constant dense<0.000000e+00> : vector<8x22xf32>
    %9 = tpu.matmul %7, %8, %cst_8 {dimension_numbers = #tpu.dot_dimension_numbers<[1], [0], [0], [1], [0, 0, 1, 1], [], []>} : vector<8x128xf32>, vector<128x22xf32>, vector<8x22xf32> -> vector<8x22xf32>
    %c0_9 = arith.constant 0 : index
    %c0_10 = arith.constant 0 : index
    %10 = vector.load %arg5[%c0_9, %c0_10] : memref<1x22xf32, #tpu.memory_space<vmem>>, vector<1x22xf32>
    %11 = vector.broadcast %10 : vector<1x22xf32> to vector<8x22xf32>
    %12 = arith.addf %9, %11 : vector<8x22xf32>
    %c0_11 = arith.constant 0 : index
    %c0_12 = arith.constant 0 : index
    %13 = vector.load %arg6[%c0_11, %c0_12] : memref<8x22xf32, #tpu.memory_space<vmem>>, vector<8x22xf32>
    tpu.vector_store %arg6[%c0_11, %c0_12], %12 {strides = array<i32>} : memref<8x22xf32, #tpu.memory_space<vmem>>, vector<8x22xf32>,
    return
  }
  func.func @transform_0(%arg0: i32) -> (i32, i32) {
    %c0_i32 = arith.constant 0 : i32
    %c0_i32_0 = arith.constant 0 : i32
    return %arg0, %c0_i32 : i32, i32
  }
  func.func @transform_1(%arg0: i32) -> (i32, i32) {
    %c0_i32 = arith.constant 0 : i32
    %c0_i32_0 = arith.constant 0 : i32
    %c0_i32_1 = arith.constant 0 : i32
    return %c0_i32, %c0_i32_0 : i32, i32
  }
  func.func @transform_2(%arg0: i32) -> (i32, i32) {
    %c0_i32 = arith.constant 0 : i32
    %c0_i32_0 = arith.constant 0 : i32
    %c0_i32_1 = arith.constant 0 : i32
    return %c0_i32, %c0_i32_0 : i32, i32
  }
  func.func @transform_3(%arg0: i32) -> (i32, i32) {
    %c0_i32 = arith.constant 0 : i32
    %c0_i32_0 = arith.constant 0 : i32
    %c0_i32_1 = arith.constant 0 : i32
    return %c0_i32, %c0_i32_0 : i32, i32
  }
  func.func @transform_4(%arg0: i32) -> (i32, i32) {
    %c0_i32 = arith.constant 0 : i32
    %c0_i32_0 = arith.constant 0 : i32
    %c0_i32_1 = arith.constant 0 : i32
    return %c0_i32, %c0_i32_0 : i32, i32
  }
  func.func @transform_5(%arg0: i32) -> (i32, i32) {
    %c0_i32 = arith.constant 0 : i32
    %c0_i32_0 = arith.constant 0 : i32
    return %arg0, %c0_i32 : i32, i32
  }
}

</mosaic_0001>

<bundles_post_ra>
// kernel: crop_recommendation_forward.1
= control target key start
LH: loop header
LB: loop body
LE: loop exit
PB: predicated region body
PF: predicated region fallthrough
CT: control target
= control target key end

     0   :  { %vm34_vm0 = vcmask 1046528   ;;  %v333_v2 = vmov 0.0   ;;  %vm334_vm1 = vmmov 0   ;;  %vm30_vm2 = vcmask 56320   ;;  %s439_s0 = inlined_call_operand.vmem [shape: f32[8,7], index: 0, kind: input, shape index: {}]   ;;  %s440_s1 = inlined_call_operand.vmem [shape: f32[7,128], index: 1, kind: input, shape index: {}]   ;;  %s441_s2 = inlined_call_operand.vmem [shape: f32[1,128], index: 2, kind: input, shape index: {}]   ;;  %s442_s3 = inlined_call_operand.vmem [shape: f32[128,22], index: 3, kind: input, shape index: {}]   ;;  %s443_s4 = inlined_call_operand.vmem [shape: f32[1,22], index: 4, kind: input, shape index: {}]   ;;  %s444_s5 = inlined_call_operand.hbm [shape: f32[8,22], index: 5, kind: output, shape index: {}]  }
   0x1   :  { %v22_v0 = vld [vmem:[%s440_s1] sm:$0x7f]  ;;  %241 = vmatprep.subr.mxu0 %v333_v2  ;;  %243 = vmatprep.mubr.msk.f32.mxu0 %vm334_vm1, %v333_v2  ;;  %v110_v4 = vld [vmem:[%s442_s3 + $0x8] sm:$0xff]  ;;  %v111_v5 = vld [vmem:[%s442_s3 + $0x10] sm:$0xff]  ;;  %v335_v6 = vmov 0.0|0.0  }
   0x2   :  { %v21_v1 = vld [vmem:[%s439_s0] sm:$0xff]  ;;  %242 = vmatpush3.msk.msra.mxu0 %vm34_vm0, %v22_v0  ;;  %281 = vmatprep.subr.bf16.mxu1 %v335_v6  ;;  %v112_v8 = vld [vmem:[%s442_s3 + $0x18] sm:$0xff]  ;;  %v114_v11 = vld [vmem:[%s442_s3 + $0x28] sm:$0xff] }
   0x3   :  { %v109_v3 = vld [vmem:[%s442_s3] sm:$0xff]  ;;  %244 = vmatmul.mubr.msk.f32.vlgmr.msra.gmra.mrb[0].mxu0 %vm30_vm2, %v21_v1  ;;  %278 = vmatprep.mubr.msk.f32.mxu1 %vm334_vm1, %v333_v2  ;;  %v285_v9 = vpack.c.bf16 %v112_v8, %v111_v5 }
   0x4   :  { %v282_v7 = vpack.c.bf16 %v110_v4, %v109_v3  ;;  %v113_v10 = vld [vmem:[%s442_s3 + $0x20] sm:$0xff] }
   0x6   :  { %283 = vmatpush3.bf16.msra.mxu1 %v282_v7 }
   0x7   :  { %284 = vmatprep.subr.bf16.mxu1 %v335_v6 }
   0x8   :  { %10 = vsyncpa [#allocation3], 0  ;;  %v288_v12 = vpack.c.bf16 %v114_v11, %v113_v10  ;;  %v115_v13 = vld [vmem:[%s442_s3 + $0x30] sm:$0xff]  ;;  %v116_v14 = vld [vmem:[%s442_s3 + $0x38] sm:$0xff]  ;;  %s336_s29 = smov [#allocation2]   ;;  %vm202_vm3 = vcmask 179200  }
   0x9   :  { %v291_v15 = vpack.c.bf16 %v116_v14, %v115_v13  ;;  %v117_v16 = vld [vmem:[%s442_s3 + $0x40] sm:$0xff]  ;;  %v118_v17 = vld [vmem:[%s442_s3 + $0x48] sm:$0xff]  ;;  %v119_v19 = vld [vmem:[%s442_s3 + $0x50] sm:$0xff]  ;;  %s210_s30 = sshll.u32 %s336_s29, 4  ;;  %s211_s30 = int_to_ptr.vmem [resolvable:$true] %s210_s30 }
   0xa   :  { %286 = vmatpush3.bf16.msra.mxu1 %v285_v9  ;;  %v294_v18 = vpack.c.bf16 %v118_v17, %v117_v16  ;;  %v120_v20 = vld [vmem:[%s442_s3 + $0x58] sm:$0xff]  ;;  %v121_v22 = vld [vmem:[%s442_s3 + $0x60] sm:$0xff]  ;;  %v122_v23 = vld [vmem:[%s442_s3 + $0x68] sm:$0xff]  ;;  %p314_p1 = scmp.lt.s32.totalorder %s211_s30, %s211_s30 }
   0xb   :  { %287 = vmatprep.subr.bf16.mxu1 %v335_v6  ;;  %v297_v21 = vpack.c.bf16 %v120_v20, %v119_v19  ;;  %v300_v24 = vpack.c.bf16 %v122_v23, %v121_v22  ;;  %v123_v25 = vld [vmem:[%s442_s3 + $0x70] sm:$0xff]  ;;  %v124_v26 = vld [vmem:[%s442_s3 + $0x78] sm:$0xff]  ;;  %v218_v28 = vld [vmem:[%s441_s2] ss:$0 sm:$0xff]  ;;  %s309_s3 = scalar_lea.vmem %s211_s30, 128 }
   0xc   :  { %v303_v27 = vpack.c.bf16 %v124_v26, %v123_v25  ;;  %v221_v33 = vld [vmem:[%s443_s4] ss:$0 sm:$0xff]  ;;  %p310_p0 = scmp.ne.s32.totalorder %s211_s30, %s309_s3  ;;  %p315_p2 = scmp.lt.s32.totalorder %s309_s3, %s309_s3 }
   0xe   :  { %289 = vmatpush3.bf16.msra.mxu1 %v288_v12  ;;  %p316_p3 = por %p315_p2, %p314_p1 }
   0xf   :  { %290 = vmatprep.subr.bf16.mxu1 %v335_v6 }
  0x10   :  { %p317_p4 = pnand %p316_p3, %p310_p0 }
  0x12   :  { %292 = vmatpush3.bf16.msra.mxu1 %v291_v15 }
  0x13   :  { %293 = vmatprep.subr.bf16.mxu1 %v335_v6 }
  0x16   :  { %295 = vmatpush3.bf16.msra.mxu1 %v294_v18 }
  0x17   :  { %296 = vmatprep.subr.bf16.mxu1 %v335_v6 }
  0x1a   :  { %298 = vmatpush3.bf16.msra.mxu1 %v297_v21 }
  0x1b   :  { %299 = vmatprep.subr.bf16.mxu1 %v335_v6 }
  0x1e   :  { %301 = vmatpush3.bf16.msra.mxu1 %v300_v24 }
  0x1f   :  { %302 = vmatprep.subr.bf16.mxu1 %v335_v6 }
  0x22   :  { %304 = vmatpush3.bf16.msra.mxu1 %v303_v27 }
  0xd6   :  { %v104_v29 = vpop.f32.mrb[0].mxu0 }
  0xd7   :  { %v105_v30 = vadd.f32 %v218_v28, %v104_v29  ;;  %v245_v31 = vpop.f32.mrb[1].mxu0 }
  0xd9   :  { %v108_v32 = vmax.f32 %v105_v30, 0.0 }
  0xdb   :  { %279 = vmatmul.mubr.f32.vlgmr.msra.gmra.mrb[0].mxu1 %v108_v32 }
 0x1ae   :  { %v198_v34 = vpop.f32.mrb[0].mxu1 }
 0x1af   :  { %v199_v35 = vadd.f32 %v221_v33, %v198_v34  ;;  %v280_v36 = vpop.f32.mrb[1].mxu1 }
 0x1b1   :  { %203 = vst.msk [vmem:[#allocation2] sm:$0xff] %vm202_vm3, %v199_v35 }
 0x1b2   :  { %320 = shalt.err (!%p317_p4)
}
 0x1b3   :  { %s321_s7 = scalar_lea.hbm %s444_s5, 128 }
 0x1b4   :  { %p322_p5 = scmp.ne.s32.totalorder %s444_s5, %s321_s7  ;;  %p325_p6 = scmp.lt.u32.totalorder %s321_s7, %s444_s5 }
 0x1b6   :  { %p327_p7 = pnand %p325_p6, %p322_p5 }
 0x1b8   :  { %330 = shalt.err (!%p327_p7)
}
 0x1b9   :  { %213 = dma.vmem_to_hbm [thread:$0]  %s211_s30, 128, %s444_s5, [#allocation3]  }
 0x1ba   :  { %331 = dma.done.wait [#allocation3], 128  }
 0x1bb   :  { %332 = vsyncadd [#allocation3], 4294967168 }
 0x1bc   :  { %217 = vsyncpa [#allocation3], 1 }

</bundles_post_ra>
